<compile_context>
chip_gen: v6e
topology: v6e:2x2x1
jax: 0.10.0
libtpu: 0.0.40
codegen_flags: <defaults>
</compile_context>

<pallas_src>
import functools

import numpy as np
import jax
import jax.numpy as jnp
from jax.experimental import pallas as pl
from jax.experimental.pallas import tpu as pltpu


def _round_up(x, m):
    return ((x + m - 1) // m) * m


def hgcn_kernel(h_ref, a_ref, eb_ref, wg_ref, bg_ref, ex_ref, o_ref, *, B, TN, Dp):
    """One row-tile of the HierarchyGCN forward.

    h_ref : (Np, B*Dp)      full h, resident (lane b*Dp + d  <=>  h[b, n, d])
    a_ref : (2, TN, Np)     [child->parent ; parent->child] masked adjacency rows
    eb_ref: (2, TN, Dp)     compact edge biases (no batch tiling)
    wg_ref: (B*Dp, G)       small gate weight (G = round_up(3B, 128))
    bg_ref: (TN, G)         per-node gate biases in the same column layout
    ex_ref: (G, 3*B*Dp)     0/1 expansion: gate scalar -> Dp feature lanes
    o_ref : (TN, B*Dp)      ReLU(message) for this row tile
    """
    BDp = B * Dp
    row0 = pl.multiple_of(pl.program_id(0) * TN, TN)

    h_full = h_ref[...]                          # (Np, B*Dp) — arc-contraction operand
    h_tile = h_ref[pl.ds(row0, TN), :]           # (TN, B*Dp) — rows owned by this step

    # ---- hierarchy arcs: (TN, Np) x (Np, B*Dp) MXU matmuls, contraction over all nodes
    arc_in = jnp.dot(a_ref[0], h_full, preferred_element_type=jnp.float32)   # bottom-up
    arc_out = jnp.dot(a_ref[1], h_full, preferred_element_type=jnp.float32)  # top-down

    # ---- edge bias: broadcast the compact (TN, Dp) bias over the B lane blocks
    eb_in = eb_ref[0]                            # (TN, Dp), Dp % 128 == 0
    eb_out = eb_ref[1]
    eb_in_b = jnp.concatenate([eb_in] * B, axis=-1)    # (TN, B*Dp), tile-aligned copy
    eb_out_b = jnp.concatenate([eb_out] * B, axis=-1)

    # ---- gates: small matmul -> bias -> sigmoid -> tiny 0/1 expansion matmul
    gates = jnp.dot(h_tile, wg_ref[...], preferred_element_type=jnp.float32) + bg_ref[...]
    sig = jax.nn.sigmoid(gates)                                              # (TN, G)
    sig_full = jnp.dot(sig, ex_ref[...], preferred_element_type=jnp.float32)  # (TN, 3*B*Dp)

    # 128-aligned lane slices (BDp is a multiple of 128)
    sig_in = sig_full[:, :BDp]
    sig_out = sig_full[:, BDp:2 * BDp]
    sig_loop = sig_full[:, 2 * BDp:]

    msg = ((arc_in + eb_in_b) * sig_in
           + (arc_out + eb_out_b) * sig_out
           + h_tile * sig_loop)
    o_ref[...] = jnp.maximum(msg, 0.0)           # ReLU


def prepare_hierarchy_gcn(origin_adj, adj_matrix, out_adj_matrix,
                          edge_bias, out_edge_bias,
                          gate_weight, out_gate_weight, loop_gate,
                          bias_gate, out_bias_gate,
                          batch_size, row_block=256):
    """Parameter-only precompute, hoisted out of the per-forward path (run once)."""
    f32 = jnp.float32
    N, D = edge_bias.shape
    B = int(batch_size)

    Dp = _round_up(D, 128)                 # lane-align the feature dim
    BDp = B * Dp
    G = _round_up(3 * B, 128)              # padded gate-column count
    Np8 = _round_up(N, 8)
    TN = min(_round_up(row_block, 8), Np8)  # row tile (multiple of 8)
    Np = _round_up(N, TN)

    # Stacked masked adjacencies: [origin*adj ; origin.T*out_adj], zero-padded.
    a = jnp.zeros((2, Np, Np), f32)
    a = a.at[0, :N, :N].set((origin_adj * adj_matrix).astype(f32))
    a = a.at[1, :N, :N].set((origin_adj.T * out_adj_matrix).astype(f32))

    # Compact edge biases (no batch-fold tiling in HBM).
    eb = jnp.zeros((2, Np, Dp), f32)
    eb = eb.at[0, :N, :D].set(edge_bias.astype(f32))
    eb = eb.at[1, :N, :D].set(out_edge_bias.astype(f32))

    # Small gate weight: wg[b*Dp + d, g*B + b] = W_g[d]  (g = in/out/loop).
    w3 = jnp.concatenate([gate_weight, out_gate_weight, loop_gate], axis=1).astype(f32)  # (D, 3)
    w3p = jnp.pad(w3, ((0, Dp - D), (0, 0)))                                             # (Dp, 3)
    wg = jnp.einsum('dg,bc->bdgc', w3p, jnp.eye(B, dtype=f32)).reshape(BDp, 3 * B)
    wg = jnp.pad(wg, ((0, 0), (0, G - 3 * B)))                                           # (BDp, G)

    # Per-node gate biases in the same (g*B + b) column layout (loop gate has no bias).
    bg = jnp.zeros((Np, G), f32)
    bg = bg.at[:N, 0:B].set(jnp.tile(bias_gate.astype(f32), (1, B)))
    bg = bg.at[:N, B:2 * B].set(jnp.tile(out_bias_gate.astype(f32), (1, B)))

    # 0/1 expansion: ex[g*B + b, g*BDp + b*Dp + d] = 1  (broadcast gate over Dp lanes).
    ex = jnp.einsum('gh,bc,d->gbhcd',
                    jnp.eye(3, dtype=f32), jnp.eye(B, dtype=f32),
                    jnp.ones((Dp,), f32)).reshape(3 * B, 3 * BDp)
    ex = jnp.pad(ex, ((0, G - 3 * B), (0, 0)))                                           # (G, 3*BDp)

    dims = dict(B=B, N=N, D=D, Np=Np, Dp=Dp, TN=TN, G=G)
    consts = dict(a=a, eb=eb, wg=wg, bg=bg, ex=ex)
    return consts, dims


def hierarchy_gcn_forward(h, consts, dims):
    """h: (B, N, D) -> ReLU(message): (B, N, D)."""
    B, N, D = dims['B'], dims['N'], dims['D']
    Np, Dp, TN, G = dims['Np'], dims['Dp'], dims['TN'], dims['G']
    BDp = B * Dp
    f32 = jnp.float32

    # (B, N, D) -> padded (Np, B*Dp); lane b*Dp + d holds h[b, n, d].
    hp = jnp.pad(h.astype(f32), ((0, 0), (0, Np - N), (0, Dp - D)))
    h_t = jnp.transpose(hp, (1, 0, 2)).reshape(Np, BDp)

    kernel = functools.partial(hgcn_kernel, B=B, TN=TN, Dp=Dp)
    invariant = lambda i: (0, 0)

    out_t = pl.pallas_call(
        kernel,
        out_shape=jax.ShapeDtypeStruct((Np, BDp), f32),
        grid=(Np // TN,),
        in_specs=[
            # Full h stays resident across all row tiles (arc contraction needs all nodes);
            # Buffered(1): no pointless double-buffering of a grid-invariant operand.
            pl.BlockSpec((Np, BDp), invariant, pipeline_mode=pl.Buffered(buffer_count=1)),
            pl.BlockSpec((2, TN, Np), lambda i: (0, i, 0)),     # masked adjacency row tile
            pl.BlockSpec((2, TN, Dp), lambda i: (0, i, 0)),     # compact edge-bias row tile
            pl.BlockSpec((BDp, G), invariant, pipeline_mode=pl.Buffered(buffer_count=1)),
            pl.BlockSpec((TN, G), lambda i: (i, 0)),            # per-node gate bias row tile
            pl.BlockSpec((G, 3 * BDp), invariant, pipeline_mode=pl.Buffered(buffer_count=1)),
        ],
        out_specs=pl.BlockSpec((TN, BDp), lambda i: (i, 0)),    # lane-dense (BDp % 128 == 0)
        compiler_params=pltpu.CompilerParams(
            # Row tiles are independent -> shard across v7x's 2 TensorCores.
            dimension_semantics=("parallel",),
            # Explicit VMEM budget (safe on v5e/v6e/v7x at these shapes).  When scaling
            # N/D up, re-derive: resident h + wg + ex + 2x(double-buffered row tiles)
            # must stay under ~48 MiB on v7x (64 MiB physical) / ~100 MiB on v5e/v6e.
            vmem_limit_bytes=32 * 1024 * 1024,
        ),
    )(h_t, consts['a'], consts['eb'], consts['wg'], consts['bg'], consts['ex'])

    # (Np, B*Dp) -> (B, N, D)
    return jnp.transpose(out_t.reshape(Np, B, Dp), (1, 0, 2))[:, :N, :D]


def reference_forward(h, origin_adj, adj_matrix, out_adj_matrix,
                      edge_bias, out_edge_bias,
                      gate_weight, out_gate_weight, loop_gate,
                      bias_gate, out_bias_gate):
    # Plain-JAX reference mirroring the PyTorch forward (dropout = identity).
    h_in = jnp.matmul(origin_adj * adj_matrix, h) + edge_bias
    in_gate = jnp.matmul(h, gate_weight) + bias_gate
    msg = h_in * jax.nn.sigmoid(in_gate)

    h_out = jnp.matmul(origin_adj.T * out_adj_matrix, h) + out_edge_bias
    out_gate = jnp.matmul(h, out_gate_weight) + out_bias_gate
    msg = msg + h_out * jax.nn.sigmoid(out_gate)

    lgate = jnp.matmul(h, loop_gate)
    msg = msg + h * jax.nn.sigmoid(lgate)
    return jax.nn.relu(msg)


if __name__ == "__main__":
    # Small shapes; N chosen so the row-tiled grid actually runs multiple steps.
    B, N, D = 2, 24, 32

    key = jax.random.PRNGKey(0)
    k_ain, k_aout, kg, kog, klg, keb, koeb, kbg, kobg, kh = jax.random.split(key, 10)

    # Synthetic hierarchy adjacency (probability-like), deterministic.
    in_adj = jax.random.uniform(k_ain, (N, N), dtype=jnp.float32)
    out_adj = jax.random.uniform(k_aout, (N, N), dtype=jnp.float32)
    origin_adj = jnp.where(in_adj <= 0, in_adj, 1.0).astype(jnp.float32)
    adj_matrix = in_adj                       # Parameter initialised from in_adj
    out_adj_matrix = out_adj                  # Parameter initialised from out_adj

    # xavier_uniform for (D, 1) gate weights: bound = sqrt(6 / (D + 1)).
    bound = float(np.sqrt(6.0 / (D + 1)))
    gate_weight = jax.random.uniform(kg, (D, 1), minval=-bound, maxval=bound, dtype=jnp.float32)
    out_gate_weight = jax.random.uniform(kog, (D, 1), minval=-bound, maxval=bound, dtype=jnp.float32)
    loop_gate = jax.random.uniform(klg, (D, 1), minval=-bound, maxval=bound, dtype=jnp.float32)

    # reset_parameters() zero-inits these; use small non-zero values here so the
    # edge-bias / gate-bias code paths are actually exercised by the check.
    edge_bias = 0.1 * jax.random.normal(keb, (N, D), dtype=jnp.float32)
    out_edge_bias = 0.1 * jax.random.normal(koeb, (N, D), dtype=jnp.float32)
    bias_gate = 0.1 * jax.random.normal(kbg, (N, 1), dtype=jnp.float32)
    out_bias_gate = 0.1 * jax.random.normal(kobg, (N, 1), dtype=jnp.float32)  # PyTorch leaves uninitialized

    h = jax.random.normal(kh, (B, N, D), dtype=jnp.float32)

    # One-time precompute (hoisted out of the per-forward path); row_block=8 so the
    # demo runs a 3-step row grid (use the default 256 for realistic N).
    consts, dims = prepare_hierarchy_gcn(origin_adj, adj_matrix, out_adj_matrix,
                                         edge_bias, out_edge_bias,
                                         gate_weight, out_gate_weight, loop_gate,
                                         bias_gate, out_bias_gate,
                                         batch_size=B, row_block=8)

    fwd = jax.jit(lambda x: hierarchy_gcn_forward(x, consts, dims))
    out = jax.block_until_ready(fwd(h))

    ref = reference_forward(h, origin_adj, adj_matrix, out_adj_matrix,
                            edge_bias, out_edge_bias,
                            gate_weight, out_gate_weight, loop_gate,
                            bias_gate, out_bias_gate)
    np.testing.assert_allclose(np.asarray(out), np.asarray(ref), rtol=1e-5, atol=1e-5)

    print("KERNEL_OK")
</pallas_src>

<mosaic_0001>
module attributes {stable_mosaic.version = 11 : i64} {
  func.func @hgcn_kernel(%arg0: i32, %arg1: memref<24x256xf32, #tpu.memory_space<vmem>>, %arg2: memref<2x8x24xf32, #tpu.memory_space<vmem>>, %arg3: memref<2x8x128xf32, #tpu.memory_space<vmem>>, %arg4: memref<256x128xf32, #tpu.memory_space<vmem>>, %arg5: memref<8x128xf32, #tpu.memory_space<vmem>>, %arg6: memref<128x768xf32, #tpu.memory_space<vmem>>, %arg7: memref<8x256xf32, #tpu.memory_space<vmem>>) attributes {dimension_semantics = [#tpu.dimension_semantics<parallel>], iteration_bounds = array<i64: 3>, scalar_prefetch = 0 : i64, scratch_operands = 0 : i64, tpu.core_type = #tpu.core_type<tc>, window_params = [{pipeline_mode = #tpu.pipeline_mode<synchronous>, transform_indices = @transform_0, window_bounds = array<i64: 24, 256>}, {transform_indices = @transform_1, window_bounds = array<i64: 2, 8, 24>}, {transform_indices = @transform_2, window_bounds = array<i64: 2, 8, 128>}, {pipeline_mode = #tpu.pipeline_mode<synchronous>, transform_indices = @transform_3, window_bounds = array<i64: 256, 128>}, {transform_indices = @transform_4, window_bounds = array<i64: 8, 128>}, {pipeline_mode = #tpu.pipeline_mode<synchronous>, transform_indices = @transform_5, window_bounds = array<i64: 128, 768>}, {transform_indices = @transform_6, window_bounds = array<i64: 8, 256>}]} {
    %c8_i32 = arith.constant 8 : i32
    %0 = arith.muli %arg0, %c8_i32 : i32
    %1 = tpu.assume_multiple %0, 8 : i32
    %c0 = arith.constant 0 : index
    %c0_0 = arith.constant 0 : index
    %2 = vector.load %arg1[%c0, %c0_0] : memref<24x256xf32, #tpu.memory_space<vmem>>, vector<24x256xf32>
    %3 = arith.index_cast %1 : i32 to index
    %c0_1 = arith.constant 0 : index
    %4 = vector.load %arg1[%3, %c0_1] : memref<24x256xf32, #tpu.memory_space<vmem>>, vector<8x256xf32>
    %c0_2 = arith.constant 0 : index
    %c0_3 = arith.constant 0 : index
    %c0_4 = arith.constant 0 : index
    %5 = vector.load %arg2[%c0_2, %c0_3, %c0_4] : memref<2x8x24xf32, #tpu.memory_space<vmem>>, vector<1x8x24xf32>
    %6 = vector.shape_cast %5 : vector<1x8x24xf32> to vector<8x24xf32>
    %cst = arith.constant dense<0.000000e+00> : vector<8x256xf32>
    %7 = tpu.matmul %6, %2, %cst {dimension_numbers = #tpu.dot_dimension_numbers<[1], [0], [0], [1], [0, 0, 1, 1], [], []>} : vector<8x24xf32>, vector<24x256xf32>, vector<8x256xf32> -> vector<8x256xf32>
    %c1 = arith.constant 1 : index
    %c0_5 = arith.constant 0 : index
    %c0_6 = arith.constant 0 : index
    %8 = vector.load %arg2[%c1, %c0_5, %c0_6] : memref<2x8x24xf32, #tpu.memory_space<vmem>>, vector<1x8x24xf32>
    %9 = vector.shape_cast %8 : vector<1x8x24xf32> to vector<8x24xf32>
    %cst_7 = arith.constant dense<0.000000e+00> : vector<8x256xf32>
    %10 = tpu.matmul %9, %2, %cst_7 {dimension_numbers = #tpu.dot_dimension_numbers<[1], [0], [0], [1], [0, 0, 1, 1], [], []>} : vector<8x24xf32>, vector<24x256xf32>, vector<8x256xf32> -> vector<8x256xf32>
    %c0_8 = arith.constant 0 : index
    %c0_9 = arith.constant 0 : index
    %c0_10 = arith.constant 0 : index
    %11 = vector.load %arg3[%c0_8, %c0_9, %c0_10] : memref<2x8x128xf32, #tpu.memory_space<vmem>>, vector<1x8x128xf32>
    %12 = vector.shape_cast %11 : vector<1x8x128xf32> to vector<8x128xf32>
    %c1_11 = arith.constant 1 : index
    %c0_12 = arith.constant 0 : index
    %c0_13 = arith.constant 0 : index
    %13 = vector.load %arg3[%c1_11, %c0_12, %c0_13] : memref<2x8x128xf32, #tpu.memory_space<vmem>>, vector<1x8x128xf32>
    %14 = vector.shape_cast %13 : vector<1x8x128xf32> to vector<8x128xf32>
    %15 = tpu.concatenate %12, %12 in 1 : vector<8x128xf32>, vector<8x128xf32> -> vector<8x256xf32>
    %16 = tpu.concatenate %14, %14 in 1 : vector<8x128xf32>, vector<8x128xf32> -> vector<8x256xf32>
    %c0_14 = arith.constant 0 : index
    %c0_15 = arith.constant 0 : index
    %17 = vector.load %arg4[%c0_14, %c0_15] : memref<256x128xf32, #tpu.memory_space<vmem>>, vector<256x128xf32>
    %cst_16 = arith.constant dense<0.000000e+00> : vector<8x128xf32>
    %18 = tpu.matmul %4, %17, %cst_16 {dimension_numbers = #tpu.dot_dimension_numbers<[1], [0], [0], [1], [0, 0, 1, 1], [], []>} : vector<8x256xf32>, vector<256x128xf32>, vector<8x128xf32> -> vector<8x128xf32>
    %c0_17 = arith.constant 0 : index
    %c0_18 = arith.constant 0 : index
    %19 = vector.load %arg5[%c0_17, %c0_18] : memref<8x128xf32, #tpu.memory_space<vmem>>, vector<8x128xf32>
    %20 = arith.addf %18, %19 : vector<8x128xf32>
    %21 = arith.negf %20 : vector<8x128xf32>
    %22 = math.exp %21 : vector<8x128xf32>
    %cst_19 = arith.constant 1.000000e+00 : f32
    %23 = vector.broadcast %cst_19 : f32 to vector<8x128xf32>
    %24 = arith.addf %23, %22 : vector<8x128xf32>
    %25 = arith.divf %23, %24 : vector<8x128xf32>
    %c0_20 = arith.constant 0 : index
    %c0_21 = arith.constant 0 : index
    %26 = vector.load %arg6[%c0_20, %c0_21] : memref<128x768xf32, #tpu.memory_space<vmem>>, vector<128x768xf32>
    %cst_22 = arith.constant dense<0.000000e+00> : vector<8x768xf32>
    %27 = tpu.matmul %25, %26, %cst_22 {dimension_numbers = #tpu.dot_dimension_numbers<[1], [0], [0], [1], [0, 0, 1, 1], [], []>} : vector<8x128xf32>, vector<128x768xf32>, vector<8x768xf32> -> vector<8x768xf32>
    %28 = vector.extract_strided_slice %27 {offsets = [0, 0], sizes = [8, 256], strides = [1, 1]} : vector<8x768xf32> to vector<8x256xf32>
    %29 = vector.extract_strided_slice %27 {offsets = [0, 256], sizes = [8, 256], strides = [1, 1]} : vector<8x768xf32> to vector<8x256xf32>
    %30 = vector.extract_strided_slice %27 {offsets = [0, 512], sizes = [8, 256], strides = [1, 1]} : vector<8x768xf32> to vector<8x256xf32>
    %31 = arith.addf %7, %15 : vector<8x256xf32>
    %32 = arith.mulf %31, %28 : vector<8x256xf32>
    %33 = arith.addf %10, %16 : vector<8x256xf32>
    %34 = arith.mulf %33, %29 : vector<8x256xf32>
    %35 = arith.addf %32, %34 : vector<8x256xf32>
    %36 = arith.mulf %4, %30 : vector<8x256xf32>
    %37 = arith.addf %35, %36 : vector<8x256xf32>
    %cst_23 = arith.constant 0.000000e+00 : f32
    %38 = vector.broadcast %cst_23 : f32 to vector<8x256xf32>
    %39 = arith.maximumf %37, %38 : vector<8x256xf32>
    %c0_24 = arith.constant 0 : index
    %c0_25 = arith.constant 0 : index
    %40 = vector.load %arg7[%c0_24, %c0_25] : memref<8x256xf32, #tpu.memory_space<vmem>>, vector<8x256xf32>
    tpu.vector_store %arg7[%c0_24, %c0_25], %39 {strides = array<i32>} : memref<8x256xf32, #tpu.memory_space<vmem>>, vector<8x256xf32>,
    return
  }
  func.func @transform_0(%arg0: i32) -> (i32, i32) {
    %c0_i32 = arith.constant 0 : i32
    %c0_i32_0 = arith.constant 0 : i32
    %c0_i32_1 = arith.constant 0 : i32
    return %c0_i32, %c0_i32_0 : i32, i32
  }
  func.func @transform_1(%arg0: i32) -> (i32, i32, i32) {
    %c0_i32 = arith.constant 0 : i32
    %c0_i32_0 = arith.constant 0 : i32
    %c0_i32_1 = arith.constant 0 : i32
    return %c0_i32, %arg0, %c0_i32_0 : i32, i32, i32
  }
  func.func @transform_2(%arg0: i32) -> (i32, i32, i32) {
    %c0_i32 = arith.constant 0 : i32
    %c0_i32_0 = arith.constant 0 : i32
    %c0_i32_1 = arith.constant 0 : i32
    return %c0_i32, %arg0, %c0_i32_0 : i32, i32, i32
  }
  func.func @transform_3(%arg0: i32) -> (i32, i32) {
    %c0_i32 = arith.constant 0 : i32
    %c0_i32_0 = arith.constant 0 : i32
    %c0_i32_1 = arith.constant 0 : i32
    return %c0_i32, %c0_i32_0 : i32, i32
  }
  func.func @transform_4(%arg0: i32) -> (i32, i32) {
    %c0_i32 = arith.constant 0 : i32
    %c0_i32_0 = arith.constant 0 : i32
    return %arg0, %c0_i32 : i32, i32
  }
  func.func @transform_5(%arg0: i32) -> (i32, i32) {
    %c0_i32 = arith.constant 0 : i32
    %c0_i32_0 = arith.constant 0 : i32
    %c0_i32_1 = arith.constant 0 : i32
    return %c0_i32, %c0_i32_0 : i32, i32
  }
  func.func @transform_6(%arg0: i32) -> (i32, i32) {
    %c0_i32 = arith.constant 0 : i32
    %c0_i32_0 = arith.constant 0 : i32
    return %arg0, %c0_i32 : i32, i32
  }
}

</mosaic_0001>

<bundles_post_ra>
// kernel: _lambda_.1
= control target key start
LH: loop header
LB: loop body
LE: loop exit
PB: predicated region body
PF: predicated region fallthrough
CT: control target
= control target key end

     0   :  { %11 = vsyncpa [#allocation5], 0  ;;  %s1675_s0 = inlined_call_operand.vmem [shape: f32[24,256], index: 0, kind: input, shape index: {}]   ;;  %s1676_s1 = inlined_call_operand.vmem [shape: f32[2,24,24], index: 1, kind: input, shape index: {}]   ;;  %s1677_s2 = inlined_call_operand.vmem [shape: f32[2,24,128], index: 2, kind: input, shape index: {}]   ;;  %s1678_s3 = inlined_call_operand.hbm [shape: f32[256,128], index: 3, kind: input, shape index: {}]   ;;  %s1679_s4 = inlined_call_operand.hbm [shape: f32[24,128], index: 4, kind: input, shape index: {}]   ;;  %s1680_s5 = inlined_call_operand.hbm [shape: f32[128,768], index: 5, kind: input, shape index: {}]   ;;  %s1681_s6 = inlined_call_operand.vmem [shape: f32[24,256], index: 6, kind: output, shape index: {}]  }
   0x1   :  { %12 = vsyncpa [#allocation7], 0 }
   0x2   :  { %14 = vsyncpa [#allocation7 + $0x1], 0  ;;  %s1438_s21 = smov 0   ;;  %s1440_s22 = smov 0  }
   0x3   :  { %s1442_s23 = smov 0   ;;  %s1444_s24 = smov 0  }
   0x4 LB: > { %s1457_s25 = sadd.s32 4294967295, %s1393_s24   ;;  %s1460_s26 = sadd.s32 1, %s1393_s24   ;;  %s1393_s24 = sphi %s1444_s24, %s1696_s24   ;;  %s1389_s23 = sphi %s1442_s23, %s1695_s23   ;;  %s1385_s22 = sphi %s1440_s22, %s1694_s22   ;;  %s1381_s21 = sphi %s1438_s21, %s1693_s21  }
   0x5   : > { %s45_s27 = ssub.s32 %s1393_s24, %s1460_s26  ;;  %s48_s28 = sadd.s32 1, %s1389_s23 }
   0x6   : > { %p46_p0 = scmp.eq.s32.totalorder %s45_s27, 0  ;;  %p55_p1 = scmp.ne.s32.totalorder %s1389_s23, %s1385_s22 }
   0x7   : > { %p56_p2 = scmp.eq.s32.totalorder %s1393_s24, 0  ;;  %p134_p3 = scmp.ne.s32.totalorder %s1385_s22, %s1381_s21 }
   0x8   : > { %s1470_s29 = scalar_select %p46_p0, %s1389_s23, %s48_s28  }
   0x9   : > { %p1472_p4 = por %p56_p2, %p55_p1  ;;  %p1682_p5 = scmp.eq.s32.totalorder %s1457_s25, 0 }
   0xa   : > { %p1144_p6 = scmp.ge.s32.totalorder %s1393_s24, 1  ;;  %p192_p7 = scmp.lt.s32.totalorder %s1393_s24, 4 }
   0xb   : > { %p1481_p8 = por %p1682_p5, %p134_p3  ;;  %s1395_s9 = smov [#allocation4]  }
   0xc   : > { %p1485_p9 = pnand %p1144_p6, %p192_p7  ;;  %s207_s10 = sshll.u32 %s1395_s9, 4  ;;  %s208_s10 = int_to_ptr.vmem [resolvable:$true] %s207_s10 }
   0xd   : > { %s1685_s7 = scalar_select %p1481_p8, 1, 0 }
   0xe   : > { %p1219_p10 = pneg %p1485_p9  ;;  %s1396_s12 = smov [#allocation8]  }
   0xf   : > { %s220_s13 = sshll.u32 %s1396_s12, 4  ;;  %s1284_s14 = scalar_lea.vmem %s208_s10, 4096  ;;  %s221_s13 = int_to_ptr.vmem [resolvable:$true] %s220_s13 }
  0x10   : > { %p1493_p11 = pnand %p1219_p10, %p1682_p5  ;;  %p1285_p13 = scmp.ne.s32.totalorder %s208_s10, %s1284_s14 }
  0x11   : > { %p1292_p2 = scmp.lt.s32.totalorder %s208_s10, %s208_s10  ;;  %p1293_p3 = scmp.lt.s32.totalorder %s1284_s14, %s1284_s14 }
  0x12   : > { %p1275_p12 = pneg %p1493_p11 }
  0x13   : > { %p1294_p6 = por %p1293_p3, %p1292_p2 }
  0x14   : > { %p1287_p0 = pnand %p1285_p13, %p1275_p12 }
  0x16   : > { %p1288_p1 = pneg %p1287_p0 }
  0x18   : > { %p1295_p7 = pnand %p1294_p6, %p1288_p1 }
  0x1a   : > { %1298 = shalt.err (!%p1295_p7)
}
  0x1b   : > { %s1397_s15 = smov 128   ;;  %s1398_s16 = smov 8  }
  0x1c   : > { %1222 = dma.hbm_to_vmem [thread:$0]  (!%p1493_p11), %s1678_s3, 4096, %s208_s10, [#allocation5], %s1397_s15, %s1397_s15, %s1398_s16  }
  0x1d   : > { %s1310_s19 = scalar_lea.vmem %s221_s13, 12288  ;;  %p1318_p5 = scmp.lt.s32.totalorder %s221_s13, %s221_s13 }
  0x1e   : > { %p1311_p10 = scmp.ne.s32.totalorder %s221_s13, %s1310_s19  ;;  %p1319_p8 = scmp.lt.s32.totalorder %s1310_s19, %s1310_s19 }
  0x20   : > { %p1313_p13 = pnand %p1311_p10, %p1275_p12  ;;  %p1320_p2 = por %p1319_p8, %p1318_p5 }
  0x22   : > { %p1314_p0 = pneg %p1313_p13 }
  0x24   : > { %p1321_p1 = pnand %p1320_p2, %p1314_p0 }
  0x26   : > { %1324 = shalt.err (!%p1321_p1)
}
  0x27   : > { %s1399_s20 = smov 768   ;;  %s1400_s21 = smov 48  }
  0x28   : > { %1225 = dma.hbm_to_vmem [thread:$0]  (!%p1493_p11), %s1680_s5, 12288, %s221_s13, [#allocation7], %s1399_s20, %s1399_s20, %s1400_s21  }
  0x29   : > { %p1147_p3 = scmp.ge.s32.totalorder %s1393_s24, 3 }
  0x2b   : > { %230 = sbr.rel (%p1147_p3) target bundleno = 83 (0x53), region = 28 }
  0x30   : > { %233 = sbr.rel (!%p1472_p4) target bundleno = 53 (0x35), region = 32  ;;  %s235_s9 = sand.u32 (%p1472_p4), 1, %s1389_s23  }
  0x31   : > { %s1149_s10 = sshll.u32 (%p1472_p4), %s1393_s24, 3  ;;  %s1148_s12 = sshll.u32 (%p1472_p4), %s235_s9, 4 }
  0x32   : > { %s239_s16 = scalar_lea.vmem (%p1472_p4), %s1676_s1, %s1149_s10  ;;  %s237_s11 = scalar_lea.vmem (%p1472_p4), [#allocation2], %s1148_s12 }
  0x33   : > { %v270_v0 = vld [vmem:[%s239_s16] sm:$0xff] (%p1472_p4)  ;;  %v272_v1 = vld [vmem:[%s239_s16 + $0x18] sm:$0xff] (%p1472_p4) }
  0x34   : > { %271 = vst [vmem:[%s237_s11] sm:$0xff] (%p1472_p4), %v270_v0  ;;  %273 = vst [vmem:[%s237_s11 + $0x8] sm:$0xff] (%p1472_p4), %v272_v1 }
  0x35 PF: > { %279 = sbr.rel (!%p1472_p4) target bundleno = 58 (0x3a), region = 70  ;;  %s281_s13 = sand.u32 (%p1472_p4), 1, %s1389_s23  }
  0x36   : > { %s1151_s17 = sshll.u32 (%p1472_p4), %s1393_s24, 3  ;;  %s1150_s18 = sshll.u32 (%p1472_p4), %s281_s13, 4 }
  0x37   : > { %s285_s21 = scalar_lea.vmem (%p1472_p4), %s1677_s2, %s1151_s17  ;;  %s283_s27 = scalar_lea.vmem (%p1472_p4), [#allocation3], %s1150_s18 }
  0x38   : > { %v316_v2 = vld [vmem:[%s285_s21] sm:$0xff] (%p1472_p4)  ;;  %v318_v3 = vld [vmem:[%s285_s21 + $0x18] sm:$0xff] (%p1472_p4) }
  0x39   : > { %317 = vst [vmem:[%s283_s27] sm:$0xff] (%p1472_p4), %v316_v2  ;;  %319 = vst [vmem:[%s283_s27 + $0x8] sm:$0xff] (%p1472_p4), %v318_v3 }
  0x3a PF: > { %s326_s28 = sand.u32 1, %s1393_s24   ;;  %s328_s9 = sand.u32 1, %s1389_s23  }
  0x3b   : > { %s1152_s10 = sshll.u32 %s328_s9, 3  ;;  %s1153_s12 = sshll.u32 %s1393_s24, 7 }
  0x3c   : > { %s1536_s16 = scalar_lea.hbm %s1679_s4, %s1153_s12  ;;  %s330_s11 = scalar_lea.vmem [#allocation6], %s1152_s10 }
  0x3d   : > { %s337_s13 = sshll.u32 %s330_s11, 4  ;;  %s327_s17 = scalar_lea.sflag [#allocation7], %s326_s28  ;;  %s338_s13 = int_to_ptr.vmem [resolvable:$true] %s337_s13 }
  0x3e   : > { %s1325_s18 = scalar_lea.hbm %s1536_s16, 128  ;;  %s1329_s24 = scalar_lea.hbm %s1679_s4, 384 }
  0x3f   : > { %p1326_p5 = scmp.ne.s32.totalorder %s1536_s16, %s1325_s18  ;;  %p1330_p12 = scmp.lt.s32.totalorder %s1536_s16, %s1679_s4 }
  0x40   : > { %p1331_p6 = scmp.lt.s32.totalorder %s1329_s24, %s1325_s18 }
  0x41   : > { %p1327_p8 = pnand %p1326_p5, %p1472_p4 }
  0x42   : > { %p1332_p7 = por %p1331_p6, %p1330_p12 }
  0x43   : > { %p1328_p11 = pneg %p1327_p8 }
  0x45   : > { %p1333_p10 = pnand %p1332_p7, %p1328_p11 }
  0x47   : > { %1336 = shalt.err (!%p1333_p10)
}
  0x48   : > { %s1337_s9 = scalar_lea.vmem %s338_s13, 128  ;;  %s1401_s28 = smov [#allocation6]  }
  0x49   : > { %p1338_p13 = scmp.ne.s32.totalorder %s338_s13, %s1337_s9  ;;  %s1341_s10 = sshll.u32 %s1401_s28, 4  ;;  %s1342_s10 = int_to_ptr.vmem [resolvable:$false] %s1341_s10 }
  0x4a   : > { %s1343_s12 = scalar_lea.vmem %s1342_s10, 256  ;;  %p1344_p1 = scmp.lt.s32.totalorder %s338_s13, %s1342_s10 }
  0x4b   : > { %p1339_p0 = pnand %p1338_p13, %p1472_p4  ;;  %p1345_p3 = scmp.lt.s32.totalorder %s1343_s12, %s1337_s9 }
  0x4d   : > { %p1340_p2 = pneg %p1339_p0  ;;  %p1346_p5 = por %p1345_p3, %p1344_p1 }
  0x4f   : > { %p1347_p8 = pnand %p1346_p5, %p1340_p2 }
  0x51   : > { %1350 = shalt.err (!%p1347_p8)
}
  0x52   : > { %1213 = dma.hbm_to_vmem [thread:$0]  (%p1472_p4), %s1536_s16, 128, %s338_s13, %s327_s17  }
  0x53 PF: > { %346 = sbr.rel (%p1485_p9) target bundleno = 605 (0x25d), region = 112  ;;  %s349_s14 = sand.u32 (!%p1485_p9), 1, %s1385_s22  }
  0x54   : > { %s1557_s15 = sshll.u32 (!%p1485_p9), %s349_s14, 4  ;;  %p1688_p11 = scmp.eq.s32.totalorder (!%p1485_p9), %s1457_s25, 0 }
  0x55   : > { %s351_s11 = scalar_lea.vmem (!%p1485_p9), [#allocation2], %s1557_s15  ;;  %s358_s18 = scalar_lea.vmem (!%p1485_p9), [#allocation3], %s1557_s15 }
  0x58   : > { %1368 = dma.done.wait (%p1688_p11), [#allocation5], 4096   ;;  %p1689_p12 = pmov %p1688_p11 }
  0x59   : > { %s366_s30 = sand.u32 1, %s1457_s25   ;;  %s1566_s16 = sshll.u32 %s349_s14, 3 }
  0x5a   : > { %1370 = vsyncadd (%p1689_p12), [#allocation5], 4294963200  ;;  %s367_s8 = scalar_lea.sflag [#allocation7], %s366_s30  ;;  %s370_s13 = scalar_lea.vmem [#allocation6], %s1566_s16 }
  0x5b   : > { %p1690_p4 = scmp.ne.s32.totalorder %s1685_s7, 0 }
  0x5d   : > { %1372 = dma.done.wait (%p1690_p4), %s367_s8, 128  }
  0x5e   : > { %1374 = vsyncadd (%p1690_p4), %s367_s8, 4294967168  ;;  %p1691_p9 = pmov %p1688_p11 }
  0x60   : > { %1376 = dma.done.wait (%p1691_p9), [#allocation7], 12288   ;;  %p1692_p6 = pmov %p1691_p9 }
  0x61   : > { %s1162_s17 = sshll.u32 %s1457_s25, 3  ;;  %v467_v4 = vld [vmem:[#allocation4 + $0xf8] sm:$0xff]  ;;  %v466_v6 = vld [vmem:[#allocation4 + $0xf0] sm:$0xff]  ;;  %v465_v8 = vld [vmem:[#allocation4 + $0xe8] sm:$0xff]  ;;  %vm854_vm0 = vcmask 195584   ;;  %p411_p7 = scmp.lt.s32.totalorder %s1457_s25, 2 }
  0x62   : > { %1378 = vsyncadd (%p1692_p6), [#allocation7], 4294955008  ;;  %v451_v5 = vld [vmem:[#allocation4 + $0x78] sm:$0xff]  ;;  %1174 = vmatprep.subr.mxu0 %v467_v4  ;;  %v450_v7 = vld [vmem:[#allocation4 + $0x70] sm:$0xff]  ;;  %s423_s19 = sshra.s32 %s1162_s17, 3 }
  0x63   : > { %1175 = vmatpush3.msra.mxu0 %v451_v5  ;;  %v449_v9 = vld [vmem:[#allocation4 + $0x68] sm:$0xff]  ;;  %v464_v10 = vld [vmem:[#allocation4 + $0xe0] sm:$0xff]  ;;  %s1173_s7 = sshll.u32 %s423_s19, 4  ;;  %v463_v12 = vld [vmem:[#allocation4 + $0xd8] sm:$0xff]  ;;  %s1698_s25 = smov (!%p411_p7, %s1457_s25), 2 }
  0x64   : > { %1176 = vmatprep.subr.mxu0 %v466_v6  ;;  %v448_v11 = vld [vmem:[#allocation4 + $0x60] sm:$0xff]  ;;  %v447_v13 = vld [vmem:[#allocation4 + $0x58] sm:$0xff]  ;;  %s1581_s21 = scalar_lea.vmem %s1675_s0, %s1173_s7  ;;  %v462_v14 = vld [vmem:[#allocation4 + $0xd0] sm:$0xff] }
  0x65   : > { %1177 = vmatpush3.msra.mxu0 %v450_v7  ;;  %v446_v15 = vld [vmem:[#allocation4 + $0x50] sm:$0xff]  ;;  %v461_v16 = vld [vmem:[#allocation4 + $0xc8] sm:$0xff]  ;;  %v460_v19 = vld [vmem:[#allocation4 + $0xc0] sm:$0xff] }
  0x66   : > { %1178 = vmatprep.subr.mxu0 %v465_v8  ;;  %v1584_v17 = vld [vmem:[%s1581_s21 + $0x8] sm:$0xff]  ;;  %v444_v20 = vld [vmem:[#allocation4 + $0x40] sm:$0xff]  ;;  %v459_v21 = vld [vmem:[#allocation4 + $0xb8] sm:$0xff] }
  0x67   : > { %1179 = vmatpush3.msra.mxu0 %v449_v9  ;;  %v445_v18 = vld [vmem:[#allocation4 + $0x48] sm:$0xff]  ;;  %533 = vmatprep.mubr.f32.mxu0 %v1584_v17  ;;  %v443_v22 = vld [vmem:[#allocation4 + $0x38] sm:$0xff]  ;;  %v458_v23 = vld [vmem:[#allocation4 + $0xb0] sm:$0xff] }
  0x68   : > { %1180 = vmatprep.subr.mxu0 %v464_v10  ;;  %v442_v24 = vld [vmem:[#allocation4 + $0x30] sm:$0xff]  ;;  %v457_v25 = vld [vmem:[#allocation4 + $0xa8] sm:$0xff]  ;;  %v456_v27 = vld [vmem:[#allocation4 + $0xa0] sm:$0xff] }
  0x69   : > { %1181 = vmatpush3.msra.mxu0 %v448_v11  ;;  %v441_v26 = vld [vmem:[#allocation4 + $0x28] sm:$0xff]  ;;  %v440_v28 = vld [vmem:[#allocation4 + $0x20] sm:$0xff]  ;;  %v455_v29 = vld [vmem:[#allocation4 + $0x98] sm:$0xff] }
  0x6a   : > { %1182 = vmatprep.subr.mxu0 %v463_v12  ;;  %v439_v30 = vld [vmem:[#allocation4 + $0x18] sm:$0xff]  ;;  %v454_v31 = vld [vmem:[#allocation4 + $0x90] sm:$0xff]  ;;  %v453_v33 = vld [vmem:[#allocation4 + $0x88] sm:$0xff] }
  0x6b   : > { %1183 = vmatpush3.msra.mxu0 %v447_v13  ;;  %v438_v32 = vld [vmem:[#allocation4 + $0x10] sm:$0xff]  ;;  %v437_v34 = vld [vmem:[#allocation4 + $0x8] sm:$0xff]  ;;  %v452_v35 = vld [vmem:[#allocation4 + $0x80] sm:$0xff] }
  0x6c   : > { %1184 = vmatprep.subr.mxu0 %v462_v14  ;;  %v436_v36 = vld [vmem:[#allocation4] sm:$0xff]  ;;  %v636_v38 = vld [vmem:[#allocation8 + $0x2d8] sm:$0xff]  ;;  %v638_v39 = vld [vmem:[#allocation8 + $0x2e8] sm:$0xff] }
  0x6d   : > { %1185 = vmatpush3.msra.mxu0 %v446_v15  ;;  %v1588_v37 = vld [vmem:[%s1581_s21] sm:$0xff]  ;;  %641 = vmatprep.subr.mxu1 %v636_v38  ;;  %v637_v41 = vld [vmem:[#allocation8 + $0x2e0] sm:$0xff]  ;;  %v630_v42 = vld [vmem:[#allocation8 + $0x2a8] sm:$0xff] }
  0x6e   : > { %1186 = vmatprep.subr.mxu0 %v461_v16  ;;  %v635_v40 = vld [vmem:[#allocation8 + $0x2d0] sm:$0xff]  ;;  %v632_v43 = vld [vmem:[#allocation8 + $0x2b8] sm:$0xff]  ;;  %v629_v44 = vld [vmem:[#allocation8 + $0x2a0] sm:$0xff] }
  0x6f   : > { %1187 = vmatpush3.msra.mxu0 %v445_v18  ;;  %642 = vmatpush1.msra.mxu1 %v635_v40  ;;  %v631_v45 = vld [vmem:[#allocation8 + $0x2b0] sm:$0xff]  ;;  %v624_v46 = vld [vmem:[#allocation8 + $0x278] sm:$0xff]  ;;  %v626_v47 = vld [vmem:[#allocation8 + $0x288] sm:$0xff] }
  0x70   : > { %1188 = vmatprep.subr.mxu0 %v460_v19  ;;  %643 = vmatprep.subr.mxu1 %v630_v42  ;;  %v623_v48 = vld [vmem:[#allocation8 + $0x270] sm:$0xff]  ;;  %v625_v49 = vld [vmem:[#allocation8 + $0x280] sm:$0xff]  ;;  %v618_v50 = vld [vmem:[#allocation8 + $0x248] sm:$0xff]  ;;  %v1402_v42 = vmov 0.0  }
  0x71   : > { %1189 = vmatpush3.msra.mxu0 %v444_v20  ;;  %644 = vmatpush1.msra.mxu1 %v629_v44  ;;  %v620_v51 = vld [vmem:[#allocation8 + $0x258] sm:$0xff]  ;;  %v617_v52 = vld [vmem:[#allocation8 + $0x240] sm:$0xff]  ;;  %v619_v53 = vld [vmem:[#allocation8 + $0x250] sm:$0xff] }
  0x72   : > { %1190 = vmatprep.subr.mxu0 %v459_v21  ;;  %645 = vmatprep.subr.mxu1 %v624_v46  ;;  %v612_v54 = vld [vmem:[#allocation8 + $0x218] sm:$0xff]  ;;  %v614_v55 = vld [vmem:[#allocation8 + $0x228] sm:$0xff]  ;;  %v611_v56 = vld [vmem:[#allocation8 + $0x210] sm:$0xff] }
  0x73   : > { %1191 = vmatpush3.msra.mxu0 %v443_v22  ;;  %646 = vmatpush1.msra.mxu1 %v623_v48  ;;  %v613_v57 = vld [vmem:[#allocation8 + $0x220] sm:$0xff]  ;;  %v606_v58 = vld [vmem:[#allocation8 + $0x1e8] sm:$0xff]  ;;  %v608_v59 = vld [vmem:[#allocation8 + $0x1f8] sm:$0xff] }
  0x74   : > { %1192 = vmatprep.subr.mxu0 %v458_v23  ;;  %647 = vmatprep.subr.mxu1 %v618_v50  ;;  %v605_v60 = vld [vmem:[#allocation8 + $0x1e0] sm:$0xff]  ;;  %v607_v61 = vld [vmem:[#allocation8 + $0x1f0] sm:$0xff]  ;;  %v600_v62 = vld [vmem:[#allocation8 + $0x1b8] sm:$0xff] }
  0x75   : > { %1193 = vmatpush3.msra.mxu0 %v442_v24  ;;  %648 = vmatpush1.msra.mxu1 %v617_v52  ;;  %v602_v63 = vld [vmem:[#allocation8 + $0x1c8] sm:$0xff]  ;;  %v599_v0 = vld [vmem:[#allocation8 + $0x1b0] sm:$0xff]  ;;  %v601_v1 = vld [vmem:[#allocation8 + $0x1c0] sm:$0xff] }
  0x76   : > { %1194 = vmatprep.subr.mxu0 %v457_v25  ;;  %649 = vmatprep.subr.mxu1 %v612_v54  ;;  %v594_v2 = vld [vmem:[#allocation8 + $0x188] sm:$0xff]  ;;  %v596_v3 = vld [vmem:[#allocation8 + $0x198] sm:$0xff]  ;;  %v593_v4 = vld [vmem:[#allocation8 + $0x180] sm:$0xff] }
  0x77   : > { %1195 = vmatpush3.msra.mxu0 %v441_v26  ;;  %650 = vmatpush1.msra.mxu1 %v611_v56  ;;  %v595_v5 = vld [vmem:[#allocation8 + $0x190] sm:$0xff]  ;;  %v588_v6 = vld [vmem:[#allocation8 + $0x158] sm:$0xff]  ;;  %v590_v7 = vld [vmem:[#allocation8 + $0x168] sm:$0xff] }
  0x78   : > { %1196 = vmatprep.subr.mxu0 %v456_v27  ;;  %651 = vmatprep.subr.mxu1 %v606_v58  ;;  %v587_v8 = vld [vmem:[#allocation8 + $0x150] sm:$0xff]  ;;  %v589_v9 = vld [vmem:[#allocation8 + $0x160] sm:$0xff]  ;;  %v582_v10 = vld [vmem:[#allocation8 + $0x128] sm:$0xff] }
  0x79   : > { %1197 = vmatpush3.msra.mxu0 %v440_v28  ;;  %652 = vmatpush1.msra.mxu1 %v605_v60  ;;  %v584_v11 = vld [vmem:[#allocation8 + $0x138] sm:$0xff]  ;;  %v581_v12 = vld [vmem:[#allocation8 + $0x120] sm:$0xff]  ;;  %v583_v13 = vld [vmem:[#allocation8 + $0x130] sm:$0xff] }
  0x7a   : > { %1198 = vmatprep.subr.mxu0 %v455_v29  ;;  %653 = vmatprep.subr.mxu1 %v600_v62  ;;  %v576_v14 = vld [vmem:[#allocation8 + $0xf8] sm:$0xff]  ;;  %v578_v15 = vld [vmem:[#allocation8 + $0x108] sm:$0xff]  ;;  %v575_v16 = vld [vmem:[#allocation8 + $0xf0] sm:$0xff] }
  0x7b   : > { %1199 = vmatpush3.msra.mxu0 %v439_v30  ;;  %654 = vmatpush1.msra.mxu1 %v599_v0  ;;  %v577_v18 = vld [vmem:[#allocation8 + $0x100] sm:$0xff]  ;;  %v570_v19 = vld [vmem:[#allocation8 + $0xc8] sm:$0xff]  ;;  %v572_v20 = vld [vmem:[#allocation8 + $0xd8] sm:$0xff] }
  0x7c   : > { %1200 = vmatprep.subr.mxu0 %v454_v31  ;;  %655 = vmatprep.subr.mxu1 %v594_v2  ;;  %v569_v21 = vld [vmem:[#allocation8 + $0xc0] sm:$0xff]  ;;  %v571_v22 = vld [vmem:[#allocation8 + $0xd0] sm:$0xff]  ;;  %v564_v23 = vld [vmem:[#allocation8 + $0x98] sm:$0xff] }
  0x7d   : > { %1201 = vmatpush3.msra.mxu0 %v438_v32  ;;  %656 = vmatpush1.msra.mxu1 %v593_v4  ;;  %v566_v24 = vld [vmem:[#allocation8 + $0xa8] sm:$0xff]  ;;  %v563_v25 = vld [vmem:[#allocation8 + $0x90] sm:$0xff]  ;;  %v565_v26 = vld [vmem:[#allocation8 + $0xa0] sm:$0xff] }
  0x7e   : > { %1202 = vmatprep.subr.mxu0 %v453_v33  ;;  %657 = vmatprep.subr.mxu1 %v588_v6  ;;  %v558_v27 = vld [vmem:[#allocation8 + $0x68] sm:$0xff]  ;;  %v560_v28 = vld [vmem:[#allocation8 + $0x78] sm:$0xff]  ;;  %v557_v29 = vld [vmem:[#allocation8 + $0x60] sm:$0xff] }
  0x7f   : > { %1203 = vmatpush3.msra.mxu0 %v437_v34  ;;  %658 = vmatpush1.msra.mxu1 %v587_v8  ;;  %v559_v30 = vld [vmem:[#allocation8 + $0x70] sm:$0xff]  ;;  %v552_v31 = vld [vmem:[#allocation8 + $0x38] sm:$0xff]  ;;  %v554_v32 = vld [vmem:[#allocation8 + $0x48] sm:$0xff] }
  0x80   : > { %1204 = vmatprep.subr.mxu0 %v452_v35  ;;  %659 = vmatprep.subr.mxu1 %v582_v10  ;;  %v551_v33 = vld [vmem:[#allocation8 + $0x30] sm:$0xff]  ;;  %v553_v34 = vld [vmem:[#allocation8 + $0x40] sm:$0xff]  ;;  %v546_v35 = vld [vmem:[#allocation8 + $0x8] sm:$0xff] }
  0x81   : > { %1205 = vmatpush3.msra.mxu0 %v436_v36  ;;  %660 = vmatpush1.msra.mxu1 %v581_v12  ;;  %v548_v36 = vld [vmem:[#allocation8 + $0x18] sm:$0xff]  ;;  %v545_v38 = vld [vmem:[#allocation8] sm:$0xff]  ;;  %v1604_v52 = vld [vmem:[%s1675_s0 + $0x20] sm:$0xff] }
  0x82   : > { %534 = vmatmul.mubr.f32.vlgmr.msra.gmra.mxu0 %v1588_v37  ;;  %712 = vmatprep.subr.mxu0 %v638_v39  ;;  %v547_v39 = vld [vmem:[#allocation8 + $0x10] sm:$0xff]  ;;  %v640_v40 = vld [vmem:[#allocation8 + $0x2f8] sm:$0xff]  ;;  %v634_v54 = vld [vmem:[#allocation8 + $0x2c8] sm:$0xff] }
  0x83   : > { %713 = vmatpush1.msra.mxu0 %v637_v41  ;;  %661 = vmatprep.subr.mxu1 %v576_v14  ;;  %v1594_v41 = vld [vmem:[%s1675_s0 + $0x28] sm:$0xff]  ;;  %v633_v56 = vld [vmem:[#allocation8 + $0x2c0] sm:$0xff]  ;;  %v627_v60 = vld [vmem:[#allocation8 + $0x290] sm:$0xff] }
  0x84   : > { %714 = vmatprep.subr.mxu0 %v632_v43  ;;  %662 = vmatpush1.msra.mxu1 %v575_v16  ;;  %v468_v44 = vld [vmem:[%s370_s13] sm:$0xff]  ;;  %v622_v62 = vld [vmem:[#allocation8 + $0x268] sm:$0xff]  ;;  %v621_v0 = vld [vmem:[#allocation8 + $0x260] sm:$0xff] }
  0x85   : > { %715 = vmatpush1.msra.mxu0 %v631_v45  ;;  %663 = vmatprep.subr.mxu1 %v570_v19  ;;  %v628_v58 = vld [vmem:[#allocation8 + $0x298] sm:$0xff]  ;;  %v615_v2 = vld [vmem:[#allocation8 + $0x230] sm:$0xff]  ;;  %v609_v4 = vld [vmem:[#allocation8 + $0x200] sm:$0xff] }
  0x86   : > { %716 = vmatprep.subr.mxu0 %v626_v47  ;;  %664 = vmatpush1.msra.mxu1 %v569_v21  ;;  %v603_v6 = vld [vmem:[#allocation8 + $0x1d0] sm:$0xff]  ;;  %v597_v8 = vld [vmem:[#allocation8 + $0x1a0] sm:$0xff] }
  0x87   : > { %717 = vmatpush1.msra.mxu0 %v625_v49  ;;  %665 = vmatprep.subr.mxu1 %v564_v23  ;;  %v591_v10 = vld [vmem:[#allocation8 + $0x170] sm:$0xff]  ;;  %v585_v12 = vld [vmem:[#allocation8 + $0x140] sm:$0xff] }
  0x88   : > { %718 = vmatprep.subr.mxu0 %v620_v51  ;;  %666 = vmatpush1.msra.mxu1 %v563_v25  ;;  %v639_v51 = vld [vmem:[#allocation8 + $0x2f0] sm:$0xff]  ;;  %v573_v16 = vld [vmem:[#allocation8 + $0xe0] sm:$0xff] }
  0x89   : > { %719 = vmatpush1.msra.mxu0 %v619_v53  ;;  %667 = vmatprep.subr.mxu1 %v558_v27  ;;  %v579_v14 = vld [vmem:[#allocation8 + $0x110] sm:$0xff]  ;;  %v561_v21 = vld [vmem:[#allocation8 + $0x80] sm:$0xff] }
  0x8a   : > { %720 = vmatprep.subr.mxu0 %v614_v55  ;;  %668 = vmatpush1.msra.mxu1 %v557_v29  ;;  %v1611_v55 = vld [vmem:[%s1675_s0 + $0x18] sm:$0xff]  ;;  %v567_v19 = vld [vmem:[#allocation8 + $0xb0] sm:$0xff]  ;;  %v549_v25 = vld [vmem:[#allocation8 + $0x20] sm:$0xff] }
  0x8b   : > { %721 = vmatpush1.msra.mxu0 %v613_v57  ;;  %669 = vmatprep.subr.mxu1 %v552_v31  ;;  %v1618_v57 = vld [vmem:[%s1675_s0 + $0x10] sm:$0xff]  ;;  %v555_v23 = vld [vmem:[#allocation8 + $0x50] sm:$0xff] }
  0x8c   : > { %722 = vmatprep.subr.mxu0 %v608_v59  ;;  %670 = vmatpush1.msra.mxu1 %v551_v33  ;;  %v1624_v59 = vld [vmem:[%s1675_s0 + $0x8] sm:$0xff]  ;;  %v433_v33 = vld [vmem:[%s358_s18] sm:$0xff] }
  0x8d   : > { %723 = vmatpush1.msra.mxu0 %v607_v61  ;;  %671 = vmatprep.subr.mxu1 %v546_v35  ;;  %v1630_v61 = vld [vmem:[%s1675_s0] sm:$0xff] }
  0x8e   : > { %724 = vmatprep.subr.mxu0 %v602_v63  ;;  %672 = vmatpush1.msra.mxu1 %v545_v38  ;;  %v430_v63 = vld [vmem:[%s351_s11] sm:$0xff] }
  0x8f   : > { %725 = vmatpush1.msra.mxu0 %v601_v1  ;;  %705 = vmatprep.mubr.f32.mxu1 %v1402_v42  ;;  %v616_v1 = vld [vmem:[#allocation8 + $0x238] sm:$0xff] }
  0x90   : > { %726 = vmatprep.subr.mxu0 %v596_v3  ;;  %776 = vmatprep.mubr.f32.mxu0 %v1402_v42  ;;  %v610_v3 = vld [vmem:[#allocation8 + $0x208] sm:$0xff] }
  0x91   : > { %727 = vmatpush1.msra.mxu0 %v595_v5  ;;  %783 = vmatprep.subr.mxu1 %v640_v40  ;;  %v604_v5 = vld [vmem:[#allocation8 + $0x1d8] sm:$0xff] }
  0x92   : > { %728 = vmatprep.subr.mxu0 %v590_v7  ;;  %v598_v7 = vld [vmem:[#allocation8 + $0x1a8] sm:$0xff] }
  0x93   : > { %729 = vmatpush1.msra.mxu0 %v589_v9  ;;  %v592_v9 = vld [vmem:[#allocation8 + $0x178] sm:$0xff] }
  0x94   : > { %730 = vmatprep.subr.mxu0 %v584_v11  ;;  %v586_v11 = vld [vmem:[#allocation8 + $0x148] sm:$0xff] }
  0x95   : > { %731 = vmatpush1.msra.mxu0 %v583_v13  ;;  %v580_v13 = vld [vmem:[#allocation8 + $0x118] sm:$0xff] }
  0x96   : > { %732 = vmatprep.subr.mxu0 %v578_v15  ;;  %v574_v15 = vld [vmem:[#allocation8 + $0xe8] sm:$0xff] }
  0x97   : > { %733 = vmatpush1.msra.mxu0 %v577_v18  ;;  %v568_v18 = vld [vmem:[#allocation8 + $0xb8] sm:$0xff] }
  0x98   : > { %734 = vmatprep.subr.mxu0 %v572_v20  ;;  %v562_v20 = vld [vmem:[#allocation8 + $0x88] sm:$0xff] }
  0x99   : > { %735 = vmatpush1.msra.mxu0 %v571_v22  ;;  %v556_v22 = vld [vmem:[#allocation8 + $0x58] sm:$0xff] }
  0x9a   : > { %736 = vmatprep.subr.mxu0 %v566_v24  ;;  %v550_v24 = vld [vmem:[#allocation8 + $0x28] sm:$0xff] }
  0x9b   : > { %737 = vmatpush1.msra.mxu0 %v565_v26  ;;  %v1165_v26 = vld [vmem:[%s351_s11 + $0x8] sm:$0xff]  ;;  %s1172_s11 = sshll.u32 %s1698_s25, 4 }
  0x9c   : > { %738 = vmatprep.subr.mxu0 %v560_v28  ;;  %s415_s7 = scalar_lea.vmem %s1681_s6, %s1172_s11 }
  0x9d   : > { %739 = vmatpush1.msra.mxu0 %v559_v30 }
  0x9e   : > { %740 = vmatprep.subr.mxu0 %v554_v32 }
  0x9f   : > { %741 = vmatpush1.msra.mxu0 %v553_v34 }
  0xa0   : > { %742 = vmatprep.subr.mxu0 %v548_v36  ;;  %v1166_v36 = vld [vmem:[%s358_s18 + $0x8] sm:$0xff] }
  0xa1   : > { %743 = vmatpush1.msra.mxu0 %v547_v39 }
  0xa2   : > { %884 = vmatprep.subr.mxu0 %v1594_v41 }
 0x142   : > { %v1206_v43 = vpop.f32.mrf.mxu0 }
 0x144   : > { %v1207_v45 = vpop.f32.mrf.mxu0 }
 0x145   : > { %v1208_v46 = vadd.f32 %v1207_v45, %v1206_v43 }
 0x147   : > { %v536_v47 = vadd.f32 %v1208_v46, %v468_v44 }
 0x149   : > { %v1167_v48 = vmul.f32 -1.442695, %v536_v47 }
 0x14b   : > { %1269 = vpow2.f32 %v1167_v48 }
 0x158   : > { %v1270_v49 = vpop.eup %1269 }
 0x159   : > { %v542_v50 = vadd.f32 1.0, %v1270_v49 }
 0x15b   : > { %1271 = vrcp.f32 %v542_v50 }
 0x168   : > { %v1606_v53 = vpop.eup %1271 }
 0x169   : > { %706 = vmatmul.mubr.f32.vlgmr.msra.gmra.mxu1 %v1606_v53  ;;  %777 = vmatmul.mubr.f32.vlgmr.msra.gmra.mxu0 %v1606_v53 }
 0x16a   : > { %784 = vmatpush1.msra.mxu1 %v639_v51  ;;  %885 = vmatpush1.msra.mxu0 %v1604_v52 }
 0x16b   : > { %785 = vmatprep.subr.mxu1 %v634_v54  ;;  %886 = vmatprep.subr.mxu0 %v1611_v55 }
 0x16c   : > { %786 = vmatpush1.msra.mxu1 %v633_v56  ;;  %887 = vmatpush1.msra.mxu0 %v1618_v57 }
 0x16d   : > { %787 = vmatprep.subr.mxu1 %v628_v58  ;;  %888 = vmatprep.subr.mxu0 %v1624_v59 }
 0x16e   : > { %788 = vmatpush1.msra.mxu1 %v627_v60  ;;  %889 = vmatpush1.msra.mxu0 %v1630_v61 }
 0x16f   : > { %922 = vmatprep.mubr.f32.mxu0 %v1402_v42  ;;  %789 = vmatprep.subr.mxu1 %v622_v62 }
 0x170   : > { %1168 = vmatmul.mubr.msk.f32.vlgmr.msra.gmra.mxu0 %vm854_vm0, %v430_v63  ;;  %790 = vmatpush1.msra.mxu1 %v621_v0 }
 0x171   : > { %791 = vmatprep.subr.mxu1 %v616_v1  ;;  %847 = vmatprep.mubr.f32.mxu1 %v1402_v42 }
 0x172   : > { %792 = vmatpush1.msra.mxu1 %v615_v2 }
 0x173   : > { %793 = vmatprep.subr.mxu1 %v610_v3 }
 0x174   : > { %794 = vmatpush1.msra.mxu1 %v609_v4 }
 0x175   : > { %795 = vmatprep.subr.mxu1 %v604_v5 }
 0x176   : > { %796 = vmatpush1.msra.mxu1 %v603_v6 }
 0x177   : > { %797 = vmatprep.subr.mxu1 %v598_v7 }
 0x178   : > { %798 = vmatpush1.msra.mxu1 %v597_v8 }
 0x179   : > { %799 = vmatprep.subr.mxu1 %v592_v9 }
 0x17a   : > { %800 = vmatpush1.msra.mxu1 %v591_v10 }
 0x17b   : > { %801 = vmatprep.subr.mxu1 %v586_v11 }
 0x17c   : > { %802 = vmatpush1.msra.mxu1 %v585_v12 }
 0x17d   : > { %803 = vmatprep.subr.mxu1 %v580_v13 }
 0x17e   : > { %804 = vmatpush1.msra.mxu1 %v579_v14 }
 0x17f   : > { %805 = vmatprep.subr.mxu1 %v574_v15 }
 0x180   : > { %806 = vmatpush1.msra.mxu1 %v573_v16 }
 0x181   : > { %807 = vmatprep.subr.mxu1 %v568_v18 }
 0x182   : > { %808 = vmatpush1.msra.mxu1 %v567_v19 }
 0x183   : > { %809 = vmatprep.subr.mxu1 %v562_v20 }
 0x184   : > { %810 = vmatpush1.msra.mxu1 %v561_v21 }
 0x185   : > { %811 = vmatprep.subr.mxu1 %v556_v22 }
 0x186   : > { %812 = vmatpush1.msra.mxu1 %v555_v23 }
 0x187   : > { %813 = vmatprep.subr.mxu1 %v550_v24 }
 0x188   : > { %814 = vmatpush1.msra.mxu1 %v549_v25 }
 0x189   : > { %848 = vmatmul.mubr.f32.vlgmr.msra.gmra.mxu1 %v1606_v53  ;;  %960 = vmatprep.subr.mxu1 %v1594_v41 }
 0x18a   : > { %961 = vmatpush1.msra.mxu1 %v1604_v52  ;;  %998 = vmatprep.mubr.f32.mxu1 %v1402_v42 }
 0x18b   : > { %962 = vmatprep.subr.mxu1 %v1611_v55 }
 0x18c   : > { %963 = vmatpush1.msra.mxu1 %v1618_v57 }
 0x18d   : > { %964 = vmatprep.subr.mxu1 %v1624_v59 }
 0x18e   : > { %965 = vmatpush1.msra.mxu1 %v1630_v61 }
 0x18f   : > { %1169 = vmatmul.mubr.msk.f32.vlgmr.msra.gmra.mxu1 %vm854_vm0, %v1165_v26 }
 0x229   : > { %v778_v27 = vpop.f32.mrf.mxu0  ;;  %v707_v28 = vpop.f32.mrf.mxu1 }
 0x22b   : > { %v780_v29 = vpop.f32.mrf.mxu0  ;;  %v709_v30 = vpop.f32.mrf.mxu1 }
 0x230   : > { %v924_v31 = vpop.f32.mrf.mxu0 }
 0x231   : > { %v925_v38 = vadd.f32 %v924_v31, %v433_v33 }
 0x232   : > { %v926_v34 = vpop.f32.mrf.mxu0 }
 0x233   : > { %v927_v40 = vadd.f32 %v926_v34, %v433_v33  ;;  %v929_v43 = vmul.f32 %v925_v38, %v707_v28 }
 0x235   : > { %v930_v46 = vmul.f32 %v927_v40, %v709_v30 }
 0x249   : > { %v849_v32 = vpop.f32.mrf.mxu1 }
 0x24a   : > { %v1009_v47 = vmul.f32 %v849_v32, %v1588_v37 }
 0x24b   : > { %v851_v35 = vpop.f32.mrf.mxu1 }
 0x24c   : > { %v1010_v50 = vmul.f32 %v851_v35, %v1584_v17 }
 0x24f   : > { %v1000_v39 = vpop.f32.mrf.mxu1 }
 0x250   : > { %v1001_v41 = vadd.f32 %v1166_v36, %v1000_v39 }
 0x251   : > { %v1002_v42 = vpop.f32.mrf.mxu1 }
 0x252   : > { %v1005_v44 = vmul.f32 %v1001_v41, %v778_v27  ;;  %v1003_v45 = vadd.f32 %v1166_v36, %v1002_v42 }
 0x254   : > { %v1007_v48 = vadd.f32 %v1005_v44, %v929_v43  ;;  %v1006_v49 = vmul.f32 %v1003_v45, %v780_v29 }
 0x256   : > { %v1011_v51 = vadd.f32 %v1009_v47, %v1007_v48  ;;  %v1008_v52 = vadd.f32 %v1006_v49, %v930_v46 }
 0x258   : > { %v1013_v53 = vmax.f32 %v1011_v51, 0.0  ;;  %v1012_v54 = vadd.f32 %v1010_v50, %v1008_v52 }
 0x25a   : > { %1015 = vst [vmem:[%s415_s7] sm:$0xff] %v1013_v53  ;;  %v1014_v55 = vmax.f32 %v1012_v54, 0.0 }
 0x25c   : > { %1016 = vst [vmem:[%s415_s7 + $0x8] sm:$0xff] %v1014_v55 }
 0x25d PF: > { %p17_p10 = scmp.ge.s32.totalorder %s1460_s26, 5   ;;  %s1693_s21 = smov %s1385_s22 }
 0x25e   : > { %s1694_s22 = smov %s1389_s23  ;;  %s1695_s23 = smov %s1470_s29 }
 0x25f   : > { %s1696_s24 = smov %s1460_s26  ;;  %19 = sbr.rel (!%p17_p10) target bundleno = 4 (0x4), region = 188 }
 0x264   :  { %1038 = vsyncpa [#allocation5], 1 }
 0x265   :  { %1040 = vsyncpa [#allocation5 + $0x1], 1 }
 0x266   :  { %1041 = vsyncpa [#allocation7], 1 }
 0x267   :  { %1043 = vsyncpa [#allocation7 + $0x1], 1 }

</bundles_post_ra>
